<compile_context>
chip_gen: v7x
topology: tpu7x:2x2x1
jax: 0.10.0
libtpu: 0.0.40
codegen_flags: <defaults>
</compile_context>

<pallas_src>
import functools
import re

import jax
import jax.numpy as jnp
from jax import lax
from jax.experimental import pallas as pl
from jax.experimental.pallas import tpu as pltpu

LANES = 128
CHUNK_ROWS = 512          # in-kernel chunk: 512 x 128 f32 = 256 KiB of temporaries per operand
MIB = 1024 * 1024


def _tpu_generation():
    """Best-effort TPU generation (5 for v5e, 6 for v6e, 7 for v7x, 0 if unknown)."""
    try:
        kind = jax.devices()[0].device_kind
    except Exception:
        return 0
    m = re.search(r"(\d+)", kind)
    return int(m.group(1)) if m else 0


def _input_buffer_budget_bytes(gen):
    # Budget for the pipelined input buffers only (2 inputs x 2 buffers x block bytes).
    # Scoped-VMEM defaults: ~16 MiB on v5e, ~32 MiB on v6e/v7x; the per-chunk temporaries
    # (~1 MiB), (8,128) accumulators and (1,1,128) output tiles fit in the headroom.
    if gen >= 6:
        return 16 * MIB       # 4 MiB f32 blocks on v6e / v7x (rows double for bf16)
    if gen in (4, 5):
        return 8 * MIB        # 2 MiB f32 blocks on v5e
    return 4 * MIB            # unknown / older parts: stay conservative


def _choose_block_rows(rows, itemsize_x, itemsize_y, budget_bytes):
    """Rows per streaming block.  Blocks are multiples of CHUNK_ROWS (so they are aligned to
    the sublane tile of every dtype and chunk cleanly in-kernel), except for small inputs
    where a single full-extent block is used."""
    if rows <= CHUNK_ROWS:
        return rows                                   # single full-extent block (always legal)
    bytes_per_row = (itemsize_x + itemsize_y) * LANES
    max_rows = budget_bytes // (2 * bytes_per_row)    # 2 = double buffering per input
    max_rows = max(CHUNK_ROWS, (max_rows // CHUNK_ROWS) * CHUNK_ROWS)
    return min(max_rows, (rows // CHUNK_ROWS) * CHUNK_ROWS)


def _prep(a):
    """Flatten and pick a streaming dtype (no 4x-widening wrapper passes)."""
    a = jnp.ravel(a)
    dt = a.dtype
    if jnp.issubdtype(dt, jnp.floating):
        return a                                      # f32 / bf16 / f16 stream native
    if dt == jnp.bool_:
        return a.astype(jnp.int8)                     # cheap 1B -> 1B pass; streamed as int8
    if jnp.issubdtype(dt, jnp.integer) and dt.itemsize in (1, 4):
        return a                                      # int8/uint8/int32 stream native
    return a.astype(jnp.float32)                      # exotic widths: fall back


def _dice_partials_kernel(x_ref, y_ref, inter_ref, denom_ref, inter_acc, denom_acc, *,
                          num_splits, blocks_per_core, block_rows, chunk_rows, rows,
                          needs_mask):
    if num_splits == 1:
        c = 0
        i = pl.program_id(0)
    else:
        c = pl.program_id(0)      # core-split axis ("parallel": one half per TC on v7x)
        i = pl.program_id(1)      # streaming / reduction axis ("arbitrary")

    @pl.when(i == 0)
    def _():
        inter_acc[...] = jnp.zeros_like(inter_acc)
        denom_acc[...] = jnp.zeros_like(denom_acc)

    # First valid global row of this block (only needed when masking).
    block_row0 = (c * blocks_per_core + i) * block_rows if needs_mask else 0

    num_chunks = block_rows // chunk_rows     # exact by construction
    for j in range(num_chunks):               # static, fully unrolled; <= 25 chunks
        r0 = j * chunk_rows
        x = x_ref[pl.ds(r0, chunk_rows), :].astype(jnp.float32)
        y = y_ref[pl.ds(r0, chunk_rows), :].astype(jnp.float32)
        if needs_mask:
            # Rows >= `rows` are either the ragged tail of the last real block or the clamped
            # duplicate block of an uneven 2-core split; their (unspecified) contents are
            # zeroed here, which is sum-preserving and NaN-safe.
            limit = rows - (block_row0 + r0)
            row_id = lax.broadcasted_iota(jnp.int32, x.shape, 0)
            valid = row_id < limit
            zero = jnp.zeros_like(x)
            x = jnp.where(valid, x, zero)
            y = jnp.where(valid, y, zero)
        xy = x * y                            # partials of sum(x*y)
        s = x + y                             # partials of sum(x) + sum(y)
        if chunk_rows % 8 == 0:
            # Free view (splits the sublane-major axis on an (8,128) boundary); the axis-0
            # sum is pure vreg-wise VPU adds into the single (8,128) accumulator.
            inter_acc[...] += jnp.sum(xy.reshape(chunk_rows // 8, 8, LANES), axis=0)
            denom_acc[...] += jnp.sum(s.reshape(chunk_rows // 8, 8, LANES), axis=0)
        else:
            # Tiny single-block case (rows < 8): accumulator is (1, LANES).
            inter_acc[...] += jnp.sum(xy, axis=0, keepdims=True)
            denom_acc[...] += jnp.sum(s, axis=0, keepdims=True)

    @pl.when(i == blocks_per_core - 1)
    def _():
        # One small cross-sublane reduce per core; final scalar math happens in the wrapper.
        inter_ref[...] = jnp.sum(inter_acc[...], axis=0, keepdims=True).reshape(1, 1, LANES)
        denom_ref[...] = jnp.sum(denom_acc[...], axis=0, keepdims=True).reshape(1, 1, LANES)


def dice_loss(inputs, targets, smooth=1.0):
    """Pallas TPU implementation of DiceLoss.forward."""
    x = _prep(inputs)
    y = _prep(targets)
    assert x.shape == y.shape, "inputs and targets must have the same number of elements"
    n = x.shape[0]
    if n == 0:
        return jnp.float32(0.0)   # dice = smooth / smooth = 1 -> loss 0

    rows = pl.cdiv(n, LANES)
    padded_n = rows * LANES
    if padded_n != n:
        # Rare path: numel not a multiple of 128.  Zero padding is sum-preserving.
        # TODO(synk): a fully copy-free ragged-lane tail would need 1-D HBM refs + manual DMA.
        x = jnp.pad(x, (0, padded_n - n))
        y = jnp.pad(y, (0, padded_n - n))
    x2 = x.reshape(rows, LANES)   # free bitcast for contiguous arrays
    y2 = y.reshape(rows, LANES)

    gen = _tpu_generation()
    block_rows = _choose_block_rows(rows, x2.dtype.itemsize, y2.dtype.itemsize,
                                    _input_buffer_budget_bytes(gen))
    chunk_rows = min(block_rows, CHUNK_ROWS)
    acc_rows = 8 if chunk_rows % 8 == 0 else 1
    total_blocks = pl.cdiv(rows, block_rows)

    # 2-way split only where a second TensorCore exists (v7x); on v5e/v6e the extra grid
    # axis, clamp predicate and second output tile would be pure overhead.
    num_splits = 2 if (gen >= 7 and total_blocks >= 2) else 1
    blocks_per_core = pl.cdiv(total_blocks, num_splits)
    # Mask needed iff the grid's row coverage exceeds the real row count (ragged last block
    # and/or duplicate block of an uneven split) -- replaces the old padded-copy fallback.
    needs_mask = num_splits * blocks_per_core * block_rows > rows

    if num_splits == 1:
        grid = (blocks_per_core,)
        in_map = lambda i: (i, 0)
        out_map = lambda i: (0, 0, 0)
        dims = ("arbitrary",)
    else:
        grid = (num_splits, blocks_per_core)

        def in_map(c, i):
            # Clamp so the duplicate tail block of an uneven split stays in bounds (its
            # contribution is masked to zero in the kernel); returning the same block index
            # as the previous step lets the pipeliner skip the re-fetch.
            return (jnp.minimum(c * blocks_per_core + i, total_blocks - 1), 0)

        out_map = lambda c, i: (c, 0, 0)
        dims = ("parallel", "arbitrary")

    kernel = functools.partial(
        _dice_partials_kernel,
        num_splits=num_splits,
        blocks_per_core=blocks_per_core,
        block_rows=block_rows,
        chunk_rows=chunk_rows,
        rows=rows,
        needs_mask=needs_mask,
    )

    inter_out, denom_out = pl.pallas_call(
        kernel,
        out_shape=(
            jax.ShapeDtypeStruct((num_splits, 1, LANES), jnp.float32),
            jax.ShapeDtypeStruct((num_splits, 1, LANES), jnp.float32),
        ),
        grid_spec=pltpu.PrefetchScalarGridSpec(
            num_scalar_prefetch=0,
            grid=grid,
            in_specs=[
                pl.BlockSpec((block_rows, LANES), in_map),
                pl.BlockSpec((block_rows, LANES), in_map),
            ],
            out_specs=(
                pl.BlockSpec((1, 1, LANES), out_map),
                pl.BlockSpec((1, 1, LANES), out_map),
            ),
            scratch_shapes=[
                pltpu.VMEM((acc_rows, LANES), jnp.float32),
                pltpu.VMEM((acc_rows, LANES), jnp.float32),
            ],
        ),
        compiler_params=pltpu.CompilerParams(dimension_semantics=dims),
    )(x2, y2)

    inter = jnp.sum(inter_out)
    denom = jnp.sum(denom_out)
    smooth = jnp.asarray(smooth, jnp.float32)
    dice = (2.0 * inter + smooth) / (denom + smooth)
    return 1.0 - dice


def dice_loss_ref(inputs, targets, smooth=1.0):
    x = jnp.ravel(inputs).astype(jnp.float32)
    y = jnp.ravel(targets).astype(jnp.float32)
    inter = jnp.sum(x * y)
    dice = (2.0 * inter + smooth) / (jnp.sum(x) + jnp.sum(y) + smooth)
    return 1.0 - dice


if __name__ == "__main__":
    key = jax.random.PRNGKey(0)
    k1, k2, k3, k4, k5, k6 = jax.random.split(key, 6)

    # 1) Small segmentation-style case [B, C, H, W]: single full-extent block.
    inp = jax.nn.sigmoid(jax.random.normal(k1, (2, 4, 16, 16), dtype=jnp.float32))
    tgt = (jax.random.uniform(k2, (2, 4, 16, 16)) > 0.5).astype(jnp.float32)
    out = jax.block_until_ready(dice_loss(inp, tgt, smooth=1.0))
    ref = dice_loss_ref(inp, tgt, smooth=1.0)
    assert jnp.allclose(out, ref, atol=1e-5, rtol=1e-5), (out, ref)

    # 2) Same logits with a {0,1} int8 mask: the mask streams at 1 B/elem (no wrapper
    #    up-cast to f32); the cast to f32 happens inside the kernel.
    tgt_i8 = (jax.random.uniform(k3, (2, 4, 16, 16)) > 0.5).astype(jnp.int8)
    out = jax.block_until_ready(dice_loss(inp, tgt_i8, smooth=1.0))
    ref = dice_loss_ref(inp, tgt_i8, smooth=1.0)
    assert jnp.allclose(out, ref, atol=1e-5, rtol=1e-5), (out, ref)

    # 3) Larger case: multi-block streaming + in-kernel masking of the ragged last block
    #    (6240 rows is not a multiple of the 2-6 MiB streaming blocks on any chip).
    inp3 = jax.nn.sigmoid(jax.random.normal(k4, (2, 3, 260, 512), dtype=jnp.float32))
    tgt3 = (jax.random.uniform(k5, (2, 3, 260, 512)) > 0.5).astype(jnp.float32)
    out = jax.block_until_ready(dice_loss(inp3, tgt3, smooth=1.0))
    ref = dice_loss_ref(inp3, tgt3, smooth=1.0)
    assert jnp.allclose(out, ref, atol=1e-3, rtol=1e-3), (out, ref)

    # 4) bf16 inputs whose numel (615) is not a multiple of 128: exercises the sub-128
    #    lane-tail pad and the tiny (<8 rows) single-block path.
    inp4 = jax.nn.sigmoid(jax.random.normal(k6, (3, 5, 41), dtype=jnp.bfloat16))
    tgt4 = (inp4 > 0.5).astype(jnp.bfloat16)
    out = jax.block_until_ready(dice_loss(inp4, tgt4, smooth=1.0))
    ref = dice_loss_ref(inp4, tgt4, smooth=1.0)
    assert jnp.allclose(out, ref, atol=1e-3, rtol=1e-3), (out, ref)

    print("KERNEL_OK")
</pallas_src>

<mosaic_0001>
module attributes {stable_mosaic.version = 11 : i64} {
  func.func @_dice_partials_kernel(%arg0: i32, %arg1: memref<16x128xf32, #tpu.memory_space<vmem>>, %arg2: memref<16x128xf32, #tpu.memory_space<vmem>>, %arg3: memref<1x1x128xf32, #tpu.memory_space<vmem>>, %arg4: memref<1x1x128xf32, #tpu.memory_space<vmem>>, %arg5: memref<8x128xf32, #tpu.memory_space<vmem>>, %arg6: memref<8x128xf32, #tpu.memory_space<vmem>>) attributes {dimension_semantics = [#tpu.dimension_semantics<arbitrary>], iteration_bounds = array<i64: 1>, scalar_prefetch = 0 : i64, scratch_operands = 2 : i64, tpu.core_type = #tpu.core_type<tc>, window_params = [{transform_indices = @transform_0, window_bounds = array<i64: 16, 128>}, {transform_indices = @transform_1, window_bounds = array<i64: 16, 128>}, {pipeline_mode = #tpu.pipeline_mode<synchronous>, transform_indices = @transform_2, window_bounds = array<i64: 1, 1, 128>}, {pipeline_mode = #tpu.pipeline_mode<synchronous>, transform_indices = @transform_3, window_bounds = array<i64: 1, 1, 128>}]} {
    %c0_i32 = arith.constant 0 : i32
    %0 = arith.cmpi eq, %arg0, %c0_i32 : i32
    %1 = arith.extui %0 : i1 to i32
    %c0_i32_0 = arith.constant 0 : i32
    %2 = arith.cmpi ne, %1, %c0_i32_0 : i32
    scf.if %2 {
      %cst_15 = arith.constant 0.000000e+00 : f32
      %20 = vector.broadcast %cst_15 : f32 to vector<8x128xf32>
      %c0_16 = arith.constant 0 : index
      %c0_17 = arith.constant 0 : index
      %21 = vector.load %arg5[%c0_16, %c0_17] : memref<8x128xf32, #tpu.memory_space<vmem>>, vector<8x128xf32>
      tpu.vector_store %arg5[%c0_16, %c0_17], %20 {strides = array<i32>} : memref<8x128xf32, #tpu.memory_space<vmem>>, vector<8x128xf32>,
      %cst_18 = arith.constant 0.000000e+00 : f32
      %22 = vector.broadcast %cst_18 : f32 to vector<8x128xf32>
      %c0_19 = arith.constant 0 : index
      %c0_20 = arith.constant 0 : index
      %23 = vector.load %arg6[%c0_19, %c0_20] : memref<8x128xf32, #tpu.memory_space<vmem>>, vector<8x128xf32>
      tpu.vector_store %arg6[%c0_19, %c0_20], %22 {strides = array<i32>} : memref<8x128xf32, #tpu.memory_space<vmem>>, vector<8x128xf32>,
    } else {
    }
    %c0 = arith.constant 0 : index
    %c0_1 = arith.constant 0 : index
    %3 = vector.load %arg1[%c0, %c0_1] : memref<16x128xf32, #tpu.memory_space<vmem>>, vector<16x128xf32>
    %c0_2 = arith.constant 0 : index
    %c0_3 = arith.constant 0 : index
    %4 = vector.load %arg2[%c0_2, %c0_3] : memref<16x128xf32, #tpu.memory_space<vmem>>, vector<16x128xf32>
    %5 = arith.mulf %3, %4 : vector<16x128xf32>
    %6 = arith.addf %3, %4 : vector<16x128xf32>
    %c0_4 = arith.constant 0 : index
    %c0_5 = arith.constant 0 : index
    %7 = vector.load %arg5[%c0_4, %c0_5] : memref<8x128xf32, #tpu.memory_space<vmem>>, vector<8x128xf32>
    %8 = vector.shape_cast %5 : vector<16x128xf32> to vector<2x8x128xf32>
    %cst = arith.constant dense<0.000000e+00> : vector<8x128xf32>
    %9 = vector.multi_reduction <add>, %8, %cst [0] : vector<2x8x128xf32> to vector<8x128xf32>
    %10 = arith.addf %7, %9 : vector<8x128xf32>
    %c0_6 = arith.constant 0 : index
    %c0_7 = arith.constant 0 : index
    %11 = vector.load %arg5[%c0_6, %c0_7] : memref<8x128xf32, #tpu.memory_space<vmem>>, vector<8x128xf32>
    tpu.vector_store %arg5[%c0_6, %c0_7], %10 {strides = array<i32>} : memref<8x128xf32, #tpu.memory_space<vmem>>, vector<8x128xf32>,
    %c0_8 = arith.constant 0 : index
    %c0_9 = arith.constant 0 : index
    %12 = vector.load %arg6[%c0_8, %c0_9] : memref<8x128xf32, #tpu.memory_space<vmem>>, vector<8x128xf32>
    %13 = vector.shape_cast %6 : vector<16x128xf32> to vector<2x8x128xf32>
    %cst_10 = arith.constant dense<0.000000e+00> : vector<8x128xf32>
    %14 = vector.multi_reduction <add>, %13, %cst_10 [0] : vector<2x8x128xf32> to vector<8x128xf32>
    %15 = arith.addf %12, %14 : vector<8x128xf32>
    %c0_11 = arith.constant 0 : index
    %c0_12 = arith.constant 0 : index
    %16 = vector.load %arg6[%c0_11, %c0_12] : memref<8x128xf32, #tpu.memory_space<vmem>>, vector<8x128xf32>
    tpu.vector_store %arg6[%c0_11, %c0_12], %15 {strides = array<i32>} : memref<8x128xf32, #tpu.memory_space<vmem>>, vector<8x128xf32>,
    %c0_i32_13 = arith.constant 0 : i32
    %17 = arith.cmpi eq, %arg0, %c0_i32_13 : i32
    %18 = arith.extui %17 : i1 to i32
    %c0_i32_14 = arith.constant 0 : i32
    %19 = arith.cmpi ne, %18, %c0_i32_14 : i32
    scf.if %19 {
      %c0_15 = arith.constant 0 : index
      %c0_16 = arith.constant 0 : index
      %20 = vector.load %arg5[%c0_15, %c0_16] : memref<8x128xf32, #tpu.memory_space<vmem>>, vector<8x128xf32>
      %cst_17 = arith.constant dense<0.000000e+00> : vector<128xf32>
      %21 = vector.multi_reduction <add>, %20, %cst_17 [0] : vector<8x128xf32> to vector<128xf32>
      %22 = vector.shape_cast %21 : vector<128xf32> to vector<1x128xf32>
      %23 = vector.shape_cast %22 : vector<1x128xf32> to vector<1x1x128xf32>
      %c0_18 = arith.constant 0 : index
      %c0_19 = arith.constant 0 : index
      %c0_20 = arith.constant 0 : index
      %24 = vector.load %arg3[%c0_18, %c0_19, %c0_20] : memref<1x1x128xf32, #tpu.memory_space<vmem>>, vector<1x1x128xf32>
      tpu.vector_store %arg3[%c0_18, %c0_19, %c0_20], %23 {strides = array<i32>} : memref<1x1x128xf32, #tpu.memory_space<vmem>>, vector<1x1x128xf32>,
      %c0_21 = arith.constant 0 : index
      %c0_22 = arith.constant 0 : index
      %25 = vector.load %arg6[%c0_21, %c0_22] : memref<8x128xf32, #tpu.memory_space<vmem>>, vector<8x128xf32>
      %cst_23 = arith.constant dense<0.000000e+00> : vector<128xf32>
      %26 = vector.multi_reduction <add>, %25, %cst_23 [0] : vector<8x128xf32> to vector<128xf32>
      %27 = vector.shape_cast %26 : vector<128xf32> to vector<1x128xf32>
      %28 = vector.shape_cast %27 : vector<1x128xf32> to vector<1x1x128xf32>
      %c0_24 = arith.constant 0 : index
      %c0_25 = arith.constant 0 : index
      %c0_26 = arith.constant 0 : index
      %29 = vector.load %arg4[%c0_24, %c0_25, %c0_26] : memref<1x1x128xf32, #tpu.memory_space<vmem>>, vector<1x1x128xf32>
      tpu.vector_store %arg4[%c0_24, %c0_25, %c0_26], %28 {strides = array<i32>} : memref<1x1x128xf32, #tpu.memory_space<vmem>>, vector<1x1x128xf32>,
    } else {
    }
    return
  }
  func.func @transform_0(%arg0: i32) -> (i32, i32) {
    %c0_i32 = arith.constant 0 : i32
    %c0_i32_0 = arith.constant 0 : i32
    return %arg0, %c0_i32 : i32, i32
  }
  func.func @transform_1(%arg0: i32) -> (i32, i32) {
    %c0_i32 = arith.constant 0 : i32
    %c0_i32_0 = arith.constant 0 : i32
    return %arg0, %c0_i32 : i32, i32
  }
  func.func @transform_2(%arg0: i32) -> (i32, i32, i32) {
    %c0_i32 = arith.constant 0 : i32
    %c0_i32_0 = arith.constant 0 : i32
    %c0_i32_1 = arith.constant 0 : i32
    %c0_i32_2 = arith.constant 0 : i32
    return %c0_i32, %c0_i32_0, %c0_i32_1 : i32, i32, i32
  }
  func.func @transform_3(%arg0: i32) -> (i32, i32, i32) {
    %c0_i32 = arith.constant 0 : i32
    %c0_i32_0 = arith.constant 0 : i32
    %c0_i32_1 = arith.constant 0 : i32
    %c0_i32_2 = arith.constant 0 : i32
    return %c0_i32, %c0_i32_0, %c0_i32_1 : i32, i32, i32
  }
}

</mosaic_0001>

<bundles_post_ra>
// kernel: tpu_custom_call.1
= control target key start
LH: loop header
LB: loop body
LE: loop exit
PB: predicated region body
PF: predicated region fallthrough
CT: control target
= control target key end

     0   :  { %9 = vsyncpa [#allocation5], 0  ;;  %s298_s0 = inlined_call_operand.hbm [shape: f32[16,128], index: 0, kind: input, shape index: {}]   ;;  %s299_s1 = inlined_call_operand.hbm [shape: f32[16,128], index: 1, kind: input, shape index: {}]   ;;  %s300_s2 = inlined_call_operand.hbm [shape: f32[1,1,128], index: 2, kind: output, shape index: {0}]   ;;  %s301_s3 = inlined_call_operand.hbm [shape: f32[1,1,128], index: 3, kind: output, shape index: {1}]  }
   0x1   :  { %10 = vsyncpa [#allocation8], 0 }
   0x2   :  { %11 = vsyncpa [#allocation6], 0 }
   0x3   :  { %12 = vsyncpa [#allocation11], 0  ;;  %s216_s12 = smov [#allocation4]   ;;  %s120_s16 = scalar_lea.hbm %s298_s0, 256 }
   0x4   :  { %s18_s13 = sshll.u32 %s216_s12, 4  ;;  %p121_p0 = scmp.ne.s32.totalorder %s298_s0, %s120_s16  ;;  %s19_s13 = int_to_ptr.vmem [resolvable:$true] %s18_s13 }
   0x5   :  { %p124_p1 = scmp.lt.u32.totalorder %s120_s16, %s298_s0 }
   0x7   :  { %p126_p2 = pnand %p124_p1, %p121_p0 }
   0x9   :  { %129 = shalt.err (!%p126_p2)
}
   0xa   :  { %s130_s21 = scalar_lea.vmem %s19_s13, 256  ;;  %p135_p4 = scmp.lt.s32.totalorder %s19_s13, %s19_s13 }
   0xb   :  { %p131_p3 = scmp.ne.s32.totalorder %s19_s13, %s130_s21  ;;  %p136_p5 = scmp.lt.s32.totalorder %s130_s21, %s130_s21 }
   0xd   :  { %p137_p6 = por %p136_p5, %p135_p4 }
   0xf   :  { %p138_p7 = pnand %p137_p6, %p131_p3 }
  0x11   :  { %141 = shalt.err (!%p138_p7)
}
  0x12   :  { %s217_s22 = smov 128   ;;  %s218_s23 = smov 8  }
  0x13   :  { %24 = dma.hbm_to_vmem [thread:$0]  %s298_s0, 256, %s19_s13, [#allocation5], %s217_s22, %s217_s22, %s218_s23  }
  0x14   :  { %s219_s26 = smov [#allocation7]   ;;  %s142_s30 = scalar_lea.hbm %s299_s1, 256 }
  0x15   :  { %s30_s27 = sshll.u32 %s219_s26, 4  ;;  %p143_p8 = scmp.ne.s32.totalorder %s299_s1, %s142_s30  ;;  %s31_s27 = int_to_ptr.vmem [resolvable:$true] %s30_s27 }
  0x16   :  { %p146_p9 = scmp.lt.u32.totalorder %s142_s30, %s299_s1 }
  0x18   :  { %p148_p10 = pnand %p146_p9, %p143_p8 }
  0x1a   :  { %151 = shalt.err (!%p148_p10)
}
  0x1b   :  { %s152_s8 = scalar_lea.vmem %s31_s27, 256  ;;  %p157_p12 = scmp.lt.s32.totalorder %s31_s27, %s31_s27 }
  0x1c   :  { %p153_p11 = scmp.ne.s32.totalorder %s31_s27, %s152_s8  ;;  %p158_p13 = scmp.lt.s32.totalorder %s152_s8, %s152_s8 }
  0x1e   :  { %p159_p0 = por %p158_p13, %p157_p12 }
  0x20   :  { %p160_p1 = pnand %p159_p0, %p153_p11 }
  0x22   :  { %163 = shalt.err (!%p160_p1)
}
  0x23   :  { %36 = dma.hbm_to_vmem [thread:$0]  %s299_s1, 256, %s31_s27, [#allocation8], %s217_s22, %s217_s22, %s218_s23  }
  0x24   :  { %208 = dma.done.wait [#allocation5], 256  }
  0x25   :  { %209 = vsyncadd [#allocation5], 4294967040 }
  0x26   :  { %210 = dma.done.wait [#allocation8], 256  }
  0x27   :  { %211 = vsyncadd [#allocation8], 4294967040  ;;  %v49_v0 = vld [vmem:[#allocation4] sm:$0xff]  ;;  %v50_v1 = vld [vmem:[#allocation4 + $0x8] sm:$0xff]  ;;  %s220_s1 = smov [#allocation9]   ;;  %s221_s11 = smov [#allocation10]  }
  0x28   :  { %v51_v2 = vld [vmem:[#allocation7] sm:$0xff]  ;;  %v52_v3 = vld [vmem:[#allocation7 + $0x8] sm:$0xff]  ;;  %s90_s10 = sshll.u32 %s220_s1, 4  ;;  %s100_s12 = sshll.u32 %s221_s11, 4  ;;  %s91_s10 = int_to_ptr.vmem [resolvable:$true] %s90_s10  ;;  %s266_s12 = int_to_ptr.vmem [resolvable:$true] %s100_s12 }
  0x29   :  { %v53_v4 = vmul.f32 %v51_v2, %v49_v0  ;;  %v55_v5 = vadd.f32 %v51_v2, %v49_v0  ;;  %v54_v6 = vmul.f32 %v52_v3, %v50_v1  ;;  %v56_v7 = vadd.f32 %v52_v3, %v50_v1  ;;  %s164_s13 = scalar_lea.vmem %s91_s10, 16  ;;  %s168_s14 = scalar_lea.vmem %s91_s10, 32 }
  0x2a   :  { %p165_p2 = scmp.ne.s32.totalorder %s91_s10, %s164_s13  ;;  %p169_p3 = scmp.lt.s32.totalorder %s91_s10, %s91_s10 }
  0x2b   :  { %v58_v8 = vadd.f32 %v54_v6, %v53_v4  ;;  %v62_v9 = vadd.f32 %v56_v7, %v55_v5  ;;  %p170_p4 = scmp.lt.s32.totalorder %s168_s14, %s164_s13 }
  0x2d   :  { %v69_v10 = vrot.slane %v58_v8, 4  ;;  %v77_v11 = vrot.slane %v62_v9, 4  ;;  %p171_p5 = por %p170_p4, %p169_p3 }
  0x2f   :  { %v70_v12 = vadd.f32 %v69_v10, %v58_v8  ;;  %v78_v13 = vadd.f32 %v77_v11, %v62_v9  ;;  %p172_p6 = pnand %p171_p5, %p165_p2 }
  0x31   :  { %v71_v14 = vrot.slane %v70_v12, 2  ;;  %v79_v15 = vrot.slane %v78_v13, 2 }
  0x33   :  { %v72_v16 = vadd.f32 %v71_v14, %v70_v12  ;;  %v80_v17 = vadd.f32 %v79_v15, %v78_v13 }
  0x35   :  { %v73_v18 = vrot.slane %v72_v16, 1  ;;  %v81_v19 = vrot.slane %v80_v17, 1 }
  0x37   :  { %v74_v20 = vadd.f32 %v73_v18, %v72_v16  ;;  %v82_v21 = vadd.f32 %v81_v19, %v80_v17 }
  0x39   :  { %75 = vst [vmem:[#allocation9] sm:$0x1] %v74_v20  ;;  %83 = vst [vmem:[#allocation10] sm:$0x1] %v82_v21 }
  0x3a   :  { %175 = shalt.err (!%p172_p6)
}
  0x3b   :  { %s176_s17 = scalar_lea.hbm %s300_s2, 16 }
  0x3c   :  { %p177_p7 = scmp.ne.s32.totalorder %s300_s2, %s176_s17  ;;  %p180_p8 = scmp.lt.u32.totalorder %s176_s17, %s300_s2 }
  0x3e   :  { %p182_p9 = pnand %p180_p8, %p177_p7 }
  0x40   :  { %185 = shalt.err (!%p182_p9)
}
  0x41   :  { %93 = dma.vmem_to_hbm [thread:$0]  %s91_s10, 16, %s300_s2, [#allocation6]  }
  0x42   :  { %s186_s24 = scalar_lea.vmem %s266_s12, 16  ;;  %s190_s25 = scalar_lea.vmem %s266_s12, 32 }
  0x43   :  { %p187_p10 = scmp.ne.s32.totalorder %s266_s12, %s186_s24  ;;  %p191_p11 = scmp.lt.s32.totalorder %s266_s12, %s266_s12 }
  0x44   :  { %p192_p12 = scmp.lt.s32.totalorder %s190_s25, %s186_s24 }
  0x46   :  { %p193_p13 = por %p192_p12, %p191_p11 }
  0x48   :  { %p194_p0 = pnand %p193_p13, %p187_p10 }
  0x4a   :  { %197 = shalt.err (!%p194_p0)
}
  0x4b   :  { %s198_s28 = scalar_lea.hbm %s301_s3, 16 }
  0x4c   :  { %p199_p1 = scmp.ne.s32.totalorder %s301_s3, %s198_s28  ;;  %p202_p2 = scmp.lt.u32.totalorder %s198_s28, %s301_s3 }
  0x4e   :  { %p204_p3 = pnand %p202_p2, %p199_p1 }
  0x50   :  { %207 = shalt.err (!%p204_p3)
}
  0x51   :  { %103 = dma.vmem_to_hbm [thread:$0]  %s266_s12, 16, %s301_s3, [#allocation11]  }
  0x52   :  { %212 = dma.done.wait [#allocation6], 16  }
  0x53   :  { %213 = vsyncadd [#allocation6], 4294967280 }
  0x54   :  { %214 = dma.done.wait [#allocation11], 16  }
  0x55   :  { %215 = vsyncadd [#allocation11], 4294967280 }
  0x56   :  { %110 = vsyncpa [#allocation5], 1 }
  0x57   :  { %111 = vsyncpa [#allocation8], 1 }
  0x58   :  { %112 = vsyncpa [#allocation6], 1 }
  0x59   :  { %113 = vsyncpa [#allocation11], 1 }

</bundles_post_ra>
